<compile_context>
chip_gen: v5e
topology: v5e:2x2
jax: 0.10.0
libtpu: 0.0.40
codegen_flags: <defaults>
</compile_context>

<pallas_src>
import jax
import jax.numpy as jnp
from jax import lax
from jax.experimental import pallas as pl
from jax.experimental.pallas import tpu as pltpu

EPS = 1e-4               # matches l2normalize(eps=0.0001)
POWER_ITERATIONS = 1     # module default
assert POWER_ITERATIONS >= 1, "power_iterations must be >= 1 (sigma undefined otherwise)"


def _round_up(a, m):
    return -(-a // m) * m


def _make_kernel(*, O, C_pad, KH, KW, Wp, TILE_L, HALO):
    CKKp = C_pad * KH * KW
    WIDTH = TILE_L + HALO

    def kernel(w_ref, u_ref, x_ref, xh_ref, b_ref, out_ref, sigma_ref, stack_ref):
        # ---- spectral norm: power iteration (f32, tiny). Recomputed per tile
        # so each TensorCore has sigma locally under megacore sharding. ----
        w = w_ref[...]                                   # (O, CKKp) f32
        uu = u_ref[...]                                  # (1, O)   f32
        wv = uu
        for _ in range(POWER_ITERATIONS):
            v = jnp.dot(uu, w, preferred_element_type=jnp.float32)       # (1, CKKp)
            v = v / (jnp.sqrt(jnp.sum(v * v)) + EPS)
            wv = lax.dot_general(v, w, (((1,), (1,)), ((), ())),
                                 preferred_element_type=jnp.float32)     # (1, O)
            uu = wv / (jnp.sqrt(jnp.sum(wv * wv)) + EPS)
        sigma = jnp.sum(uu * wv, axis=1, keepdims=True)                  # (1, 1)
        sigma_ref[...] = sigma
        # Fold 1/sigma into the tiny weight -> epilogue is just "+ bias".
        w_bf = (w * (1.0 / sigma)).astype(jnp.bfloat16)                  # (O, CKKp)

        # ---- fused im2col: main tile + real neighbour halo (no wrap-around) ----
        x_full = jnp.concatenate([x_ref[...], xh_ref[...]], axis=1)      # (C_pad, WIDTH) bf16
        x_f32 = x_full.astype(jnp.float32)
        # TODO(synk): roll the bf16 tile directly (and use a bf16 scratch) once
        # Mosaic packed-dtype lane rotates / half-tile sublane stores are confirmed.
        for tap in range(KH * KW):
            kh, kw = divmod(tap, KW)
            off = kh * Wp + kw                           # static tap shift
            xs = x_f32 if off == 0 else pltpu.roll(x_f32, WIDTH - off, axis=1)
            stack_ref[tap * C_pad:(tap + 1) * C_pad, :] = xs[:, :TILE_L]

        # ---- conv tile: ONE lane-dense MXU matmul, K = C_pad*KH*KW ----
        acc = jnp.dot(w_bf, stack_ref[...].astype(jnp.bfloat16),
                      preferred_element_type=jnp.float32)                # (O, TILE_L)
        out_ref[...] = (acc + b_ref[...]).astype(out_ref.dtype)

    return kernel


def spectral_norm_conv2d_forward(x, w_bar, bias, u, *, padding=1, tile_cols=512):
    """Forward of SpectralNorm(nn.Conv2d(C, O, KHxKW, stride=1, padding='same'))."""
    N, C, H, W = x.shape
    O, Cw, KH, KW = w_bar.shape
    assert C == Cw
    # This wrapper covers the stride-1 'same'-padding conv the module wraps.
    assert 2 * padding == KH - 1 and 2 * padding == KW - 1, "stride-1 'same' conv only"

    Hp, Wp = H + 2 * padding, W + 2 * padding
    n_cols = N * Hp * Wp                                  # valid flat (n, hp, wp) columns
    max_off = (KH - 1) * Wp + (KW - 1)                    # largest tap shift
    HALO = _round_up(max_off, 128)                        # 128-aligned halo block
    TILE_L = _round_up(max(tile_cols, HALO), HALO)        # lane-dense tile, multiple of HALO
    num_tiles = pl.cdiv(n_cols, TILE_L)
    L_out = num_tiles * TILE_L                            # lane-dense output width
    L_in = L_out + TILE_L                                 # + slack so halo blocks always exist
    halo_stride = TILE_L // HALO

    C_pad = _round_up(C, 8)                               # full f32 sublane tiles per tap
    CKKp = KH * KW * C_pad

    # One tap-major, channel-padded f32 weight buffer.  sigma is invariant to
    # this column permutation / zero padding of the flattened weight.
    w_conv = jnp.transpose(w_bar, (0, 2, 3, 1)).astype(jnp.float32)      # (O, KH, KW, C)
    w_conv = jnp.pad(w_conv, ((0, 0), (0, 0), (0, 0), (0, C_pad - C)))
    w_conv = w_conv.reshape(O, CKKp)
    u2d = u.reshape(1, O).astype(jnp.float32)
    b2d = bias.reshape(O, 1).astype(jnp.float32)

    # One flat, zero-padded copy of x in bf16 (no KH*KW im2col inflation in HBM):
    # x2d[c, n*Hp*Wp + hp*Wp + wp] = x_pad[n, c, hp, wp]
    x_pad = jnp.pad(x, ((0, 0), (0, 0), (padding, padding), (padding, padding)))
    x2d = jnp.transpose(x_pad, (1, 0, 2, 3)).reshape(C, n_cols)
    x2d = jnp.pad(x2d, ((0, C_pad - C), (0, L_in - n_cols))).astype(jnp.bfloat16)
    # TODO(synk): fuse the pad/transpose pass over x and the final slice/transpose
    # of the output into the kernel / consumer layout for production shapes.

    kernel = _make_kernel(O=O, C_pad=C_pad, KH=KH, KW=KW, Wp=Wp,
                          TILE_L=TILE_L, HALO=HALO)

    cost = pl.CostEstimate(
        flops=2 * O * CKKp * L_out + 4 * O * CKKp * num_tiles,
        transcendentals=2 * POWER_ITERATIONS * num_tiles,
        bytes_accessed=int(x2d.size) * 2 + int(w_conv.size) * 4 + O * L_out * 4)

    out2d, sigma = pl.pallas_call(
        kernel,
        out_shape=(jax.ShapeDtypeStruct((O, L_out), jnp.float32),
                   jax.ShapeDtypeStruct((1, 1), jnp.float32)),
        grid=(num_tiles,),
        in_specs=[pl.BlockSpec((O, CKKp), lambda i: (0, 0)),                       # weight
                  pl.BlockSpec((1, O), lambda i: (0, 0)),                          # u
                  pl.BlockSpec((C_pad, TILE_L), lambda i: (0, i)),                 # x main tile
                  pl.BlockSpec((C_pad, HALO),                                      # x halo (next tile head)
                               lambda i: (0, (i + 1) * halo_stride)),
                  pl.BlockSpec((O, 1), lambda i: (0, 0))],                         # bias
        out_specs=(pl.BlockSpec((O, TILE_L), lambda i: (0, i)),
                   pl.BlockSpec((1, 1), lambda i: (0, 0))),
        scratch_shapes=[pltpu.VMEM((CKKp, TILE_L), jnp.float32)],
        compiler_params=pltpu.CompilerParams(
            dimension_semantics=("parallel",),
            vmem_limit_bytes=32 * 1024 * 1024),
        cost_estimate=cost,
    )(w_conv, u2d, x2d, x2d, b2d)

    # Drop the spatial-padding / lane-padding garbage columns, back to NCHW.
    out = out2d[:, :n_cols].reshape(O, N, Hp, Wp)[:, :, :H, :W]
    out = jnp.transpose(out, (1, 0, 2, 3))
    return out, sigma


if __name__ == "__main__":
    key = jax.random.PRNGKey(0)
    k_w, k_b, k_u, k_x = jax.random.split(key, 4)

    # SpectralNorm(nn.Conv2d(4, 8, kernel_size=3, padding=1)), x: (2, 4, 16, 16)
    N, C, H, W = 2, 4, 16, 16
    O, KH, KW = 8, 3, 3
    fan_in = C * KH * KW
    bound = 1.0 / (fan_in ** 0.5)

    w_bar = jax.random.uniform(k_w, (O, C, KH, KW), jnp.float32, -bound, bound)
    bias = jax.random.uniform(k_b, (O,), jnp.float32, -bound, bound)
    u0 = jax.random.normal(k_u, (O,), jnp.float32)
    u = u0 / (jnp.linalg.norm(u0) + EPS)     # l2normalize at param creation
    x = jax.random.normal(k_x, (N, C, H, W), jnp.float32)

    out, sigma = spectral_norm_conv2d_forward(x, w_bar, bias, u, tile_cols=512)
    out = jax.block_until_ready(out)

    # --- pure-JAX f32 reference (faithful to the torch module) ---
    w_mat = w_bar.reshape(O, -1)
    v_ref = w_mat.T @ u
    v_ref = v_ref / (jnp.linalg.norm(v_ref) + EPS)
    u_ref = w_mat @ v_ref
    u_ref = u_ref / (jnp.linalg.norm(u_ref) + EPS)
    sigma_ref = u_ref @ (w_mat @ v_ref)
    w_sn = w_bar / sigma_ref
    ref = lax.conv_general_dilated(x, w_sn, (1, 1), ((1, 1), (1, 1)),
                                   dimension_numbers=("NCHW", "OIHW", "NCHW"))
    ref = ref + bias[None, :, None, None]

    # sigma is computed fully in f32 -> tight check.
    assert jnp.allclose(sigma[0, 0], sigma_ref, rtol=1e-4, atol=1e-5), \
        float(jnp.abs(sigma[0, 0] - sigma_ref))
    # conv uses bf16 MXU operands (f32 accumulation) -> bf16-level tolerance.
    assert jnp.allclose(out, ref, rtol=2e-2, atol=2e-2), \
        float(jnp.max(jnp.abs(out - ref)))
    print("KERNEL_OK")
</pallas_src>

<mosaic_0001>
module attributes {stable_mosaic.version = 11 : i64} {
  func.func @kernel(%arg0: i32, %arg1: memref<8x72xf32, #tpu.memory_space<vmem>>, %arg2: memref<1x8xf32, #tpu.memory_space<vmem>>, %arg3: memref<8x512xbf16, #tpu.memory_space<vmem>>, %arg4: memref<8x128xbf16, #tpu.memory_space<vmem>>, %arg5: memref<8x1xf32, #tpu.memory_space<vmem>>, %arg6: memref<8x512xf32, #tpu.memory_space<vmem>>, %arg7: memref<1x1xf32, #tpu.memory_space<vmem>>, %arg8: memref<72x512xf32, #tpu.memory_space<vmem>>) attributes {dimension_semantics = [#tpu.dimension_semantics<parallel>], iteration_bounds = array<i64: 2>, scalar_prefetch = 0 : i64, scratch_operands = 1 : i64, tpu.core_type = #tpu.core_type<tc>, window_params = [{pipeline_mode = #tpu.pipeline_mode<synchronous>, transform_indices = @transform_0, window_bounds = array<i64: 8, 72>}, {pipeline_mode = #tpu.pipeline_mode<synchronous>, transform_indices = @transform_1, window_bounds = array<i64: 1, 8>}, {transform_indices = @transform_2, window_bounds = array<i64: 8, 512>}, {transform_indices = @transform_3, window_bounds = array<i64: 8, 128>}, {pipeline_mode = #tpu.pipeline_mode<synchronous>, transform_indices = @transform_4, window_bounds = array<i64: 8, 1>}, {transform_indices = @transform_5, window_bounds = array<i64: 8, 512>}, {pipeline_mode = #tpu.pipeline_mode<synchronous>, transform_indices = @transform_6, window_bounds = array<i64: 1, 1>}]} {
    %c0 = arith.constant 0 : index
    %c0_0 = arith.constant 0 : index
    %0 = vector.load %arg1[%c0, %c0_0] : memref<8x72xf32, #tpu.memory_space<vmem>>, vector<8x72xf32>
    %c0_1 = arith.constant 0 : index
    %c0_2 = arith.constant 0 : index
    %1 = vector.load %arg2[%c0_1, %c0_2] : memref<1x8xf32, #tpu.memory_space<vmem>>, vector<1x8xf32>
    %cst = arith.constant dense<0.000000e+00> : vector<1x72xf32>
    %2 = tpu.matmul %1, %0, %cst {dimension_numbers = #tpu.dot_dimension_numbers<[1], [0], [0], [1], [0, 0, 1, 1], [], []>} : vector<1x8xf32>, vector<8x72xf32>, vector<1x72xf32> -> vector<1x72xf32>
    %3 = arith.mulf %2, %2 : vector<1x72xf32>
    %4 = vector.shape_cast %3 : vector<1x72xf32> to vector<1x1x72xf32>
    %cst_3 = arith.constant dense<0.000000e+00> : vector<1xf32>
    %5 = vector.multi_reduction <add>, %4, %cst_3 [1, 2] : vector<1x1x72xf32> to vector<1xf32>
    %6 = vector.shape_cast %5 : vector<1xf32> to vector<1x1x1xf32>
    %7 = vector.extract %6[0, 0, 0] : f32 from vector<1x1x1xf32>
    %8 = math.sqrt %7 : f32
    %cst_4 = arith.constant 9.99999974E-5 : f32
    %9 = arith.addf %8, %cst_4 : f32
    %10 = vector.broadcast %9 : f32 to vector<1x72xf32>
    %11 = arith.divf %2, %10 : vector<1x72xf32>
    %cst_5 = arith.constant dense<0.000000e+00> : vector<1x8xf32>
    %12 = tpu.matmul %11, %0, %cst_5 {dimension_numbers = #tpu.dot_dimension_numbers<[1], [1], [0], [0], [0, 0, 1, 0], [], []>} : vector<1x72xf32>, vector<8x72xf32>, vector<1x8xf32> -> vector<1x8xf32>
    %13 = arith.mulf %12, %12 : vector<1x8xf32>
    %14 = vector.shape_cast %13 : vector<1x8xf32> to vector<1x1x8xf32>
    %cst_6 = arith.constant dense<0.000000e+00> : vector<1xf32>
    %15 = vector.multi_reduction <add>, %14, %cst_6 [1, 2] : vector<1x1x8xf32> to vector<1xf32>
    %16 = vector.shape_cast %15 : vector<1xf32> to vector<1x1x1xf32>
    %17 = vector.extract %16[0, 0, 0] : f32 from vector<1x1x1xf32>
    %18 = math.sqrt %17 : f32
    %cst_7 = arith.constant 9.99999974E-5 : f32
    %19 = arith.addf %18, %cst_7 : f32
    %20 = vector.broadcast %19 : f32 to vector<1x8xf32>
    %21 = arith.divf %12, %20 : vector<1x8xf32>
    %22 = arith.mulf %21, %12 : vector<1x8xf32>
    %cst_8 = arith.constant dense<0.000000e+00> : vector<1xf32>
    %23 = vector.multi_reduction <add>, %22, %cst_8 [1] : vector<1x8xf32> to vector<1xf32>
    %24 = vector.shape_cast %23 : vector<1xf32> to vector<1x1xf32>
    %c0_9 = arith.constant 0 : index
    %c0_10 = arith.constant 0 : index
    %25 = vector.load %arg7[%c0_9, %c0_10] : memref<1x1xf32, #tpu.memory_space<vmem>>, vector<1x1xf32>
    tpu.vector_store %arg7[%c0_9, %c0_10], %24 {strides = array<i32>} : memref<1x1xf32, #tpu.memory_space<vmem>>, vector<1x1xf32>,
    %cst_11 = arith.constant 1.000000e+00 : f32
    %26 = vector.broadcast %cst_11 : f32 to vector<1x1xf32>
    %27 = arith.divf %26, %24 : vector<1x1xf32>
    %28 = vector.broadcast %27 : vector<1x1xf32> to vector<8x72xf32>
    %29 = arith.mulf %0, %28 : vector<8x72xf32>
    %30 = arith.truncf %29 : vector<8x72xf32> to vector<8x72xbf16>
    %c0_12 = arith.constant 0 : index
    %c0_13 = arith.constant 0 : index
    %31 = vector.load %arg3[%c0_12, %c0_13] : memref<8x512xbf16, #tpu.memory_space<vmem>>, vector<8x512xbf16>
    %c0_14 = arith.constant 0 : index
    %c0_15 = arith.constant 0 : index
    %32 = vector.load %arg4[%c0_14, %c0_15] : memref<8x128xbf16, #tpu.memory_space<vmem>>, vector<8x128xbf16>
    %33 = tpu.concatenate %31, %32 in 1 : vector<8x512xbf16>, vector<8x128xbf16> -> vector<8x640xbf16>
    %34 = arith.extf %33 : vector<8x640xbf16> to vector<8x640xf32>
    %35 = vector.extract_strided_slice %34 {offsets = [0, 0], sizes = [8, 512], strides = [1, 1]} : vector<8x640xf32> to vector<8x512xf32>
    %c0_16 = arith.constant 0 : index
    %c0_17 = arith.constant 0 : index
    %36 = vector.load %arg8[%c0_16, %c0_17] : memref<72x512xf32, #tpu.memory_space<vmem>>, vector<8x512xf32>
    tpu.vector_store %arg8[%c0_16, %c0_17], %35 {strides = array<i32>} : memref<72x512xf32, #tpu.memory_space<vmem>>, vector<8x512xf32>,
    %c639_i32 = arith.constant 639 : i32
    %37 = tpu.dynamic_rotate %34 by %c639_i32 dim 1 : vector<8x640xf32>, i32 -> vector<8x640xf32>
    %38 = vector.extract_strided_slice %37 {offsets = [0, 0], sizes = [8, 512], strides = [1, 1]} : vector<8x640xf32> to vector<8x512xf32>
    %c8 = arith.constant 8 : index
    %c0_18 = arith.constant 0 : index
    %39 = vector.load %arg8[%c8, %c0_18] : memref<72x512xf32, #tpu.memory_space<vmem>>, vector<8x512xf32>
    tpu.vector_store %arg8[%c8, %c0_18], %38 {strides = array<i32>} : memref<72x512xf32, #tpu.memory_space<vmem>>, vector<8x512xf32>,
    %c638_i32 = arith.constant 638 : i32
    %40 = tpu.dynamic_rotate %34 by %c638_i32 dim 1 : vector<8x640xf32>, i32 -> vector<8x640xf32>
    %41 = vector.extract_strided_slice %40 {offsets = [0, 0], sizes = [8, 512], strides = [1, 1]} : vector<8x640xf32> to vector<8x512xf32>
    %c16 = arith.constant 16 : index
    %c0_19 = arith.constant 0 : index
    %42 = vector.load %arg8[%c16, %c0_19] : memref<72x512xf32, #tpu.memory_space<vmem>>, vector<8x512xf32>
    tpu.vector_store %arg8[%c16, %c0_19], %41 {strides = array<i32>} : memref<72x512xf32, #tpu.memory_space<vmem>>, vector<8x512xf32>,
    %c622_i32 = arith.constant 622 : i32
    %43 = tpu.dynamic_rotate %34 by %c622_i32 dim 1 : vector<8x640xf32>, i32 -> vector<8x640xf32>
    %44 = vector.extract_strided_slice %43 {offsets = [0, 0], sizes = [8, 512], strides = [1, 1]} : vector<8x640xf32> to vector<8x512xf32>
    %c24 = arith.constant 24 : index
    %c0_20 = arith.constant 0 : index
    %45 = vector.load %arg8[%c24, %c0_20] : memref<72x512xf32, #tpu.memory_space<vmem>>, vector<8x512xf32>
    tpu.vector_store %arg8[%c24, %c0_20], %44 {strides = array<i32>} : memref<72x512xf32, #tpu.memory_space<vmem>>, vector<8x512xf32>,
    %c621_i32 = arith.constant 621 : i32
    %46 = tpu.dynamic_rotate %34 by %c621_i32 dim 1 : vector<8x640xf32>, i32 -> vector<8x640xf32>
    %47 = vector.extract_strided_slice %46 {offsets = [0, 0], sizes = [8, 512], strides = [1, 1]} : vector<8x640xf32> to vector<8x512xf32>
    %c32 = arith.constant 32 : index
    %c0_21 = arith.constant 0 : index
    %48 = vector.load %arg8[%c32, %c0_21] : memref<72x512xf32, #tpu.memory_space<vmem>>, vector<8x512xf32>
    tpu.vector_store %arg8[%c32, %c0_21], %47 {strides = array<i32>} : memref<72x512xf32, #tpu.memory_space<vmem>>, vector<8x512xf32>,
    %c620_i32 = arith.constant 620 : i32
    %49 = tpu.dynamic_rotate %34 by %c620_i32 dim 1 : vector<8x640xf32>, i32 -> vector<8x640xf32>
    %50 = vector.extract_strided_slice %49 {offsets = [0, 0], sizes = [8, 512], strides = [1, 1]} : vector<8x640xf32> to vector<8x512xf32>
    %c40 = arith.constant 40 : index
    %c0_22 = arith.constant 0 : index
    %51 = vector.load %arg8[%c40, %c0_22] : memref<72x512xf32, #tpu.memory_space<vmem>>, vector<8x512xf32>
    tpu.vector_store %arg8[%c40, %c0_22], %50 {strides = array<i32>} : memref<72x512xf32, #tpu.memory_space<vmem>>, vector<8x512xf32>,
    %c604_i32 = arith.constant 604 : i32
    %52 = tpu.dynamic_rotate %34 by %c604_i32 dim 1 : vector<8x640xf32>, i32 -> vector<8x640xf32>
    %53 = vector.extract_strided_slice %52 {offsets = [0, 0], sizes = [8, 512], strides = [1, 1]} : vector<8x640xf32> to vector<8x512xf32>
    %c48 = arith.constant 48 : index
    %c0_23 = arith.constant 0 : index
    %54 = vector.load %arg8[%c48, %c0_23] : memref<72x512xf32, #tpu.memory_space<vmem>>, vector<8x512xf32>
    tpu.vector_store %arg8[%c48, %c0_23], %53 {strides = array<i32>} : memref<72x512xf32, #tpu.memory_space<vmem>>, vector<8x512xf32>,
    %c603_i32 = arith.constant 603 : i32
    %55 = tpu.dynamic_rotate %34 by %c603_i32 dim 1 : vector<8x640xf32>, i32 -> vector<8x640xf32>
    %56 = vector.extract_strided_slice %55 {offsets = [0, 0], sizes = [8, 512], strides = [1, 1]} : vector<8x640xf32> to vector<8x512xf32>
    %c56 = arith.constant 56 : index
    %c0_24 = arith.constant 0 : index
    %57 = vector.load %arg8[%c56, %c0_24] : memref<72x512xf32, #tpu.memory_space<vmem>>, vector<8x512xf32>
    tpu.vector_store %arg8[%c56, %c0_24], %56 {strides = array<i32>} : memref<72x512xf32, #tpu.memory_space<vmem>>, vector<8x512xf32>,
    %c602_i32 = arith.constant 602 : i32
    %58 = tpu.dynamic_rotate %34 by %c602_i32 dim 1 : vector<8x640xf32>, i32 -> vector<8x640xf32>
    %59 = vector.extract_strided_slice %58 {offsets = [0, 0], sizes = [8, 512], strides = [1, 1]} : vector<8x640xf32> to vector<8x512xf32>
    %c64 = arith.constant 64 : index
    %c0_25 = arith.constant 0 : index
    %60 = vector.load %arg8[%c64, %c0_25] : memref<72x512xf32, #tpu.memory_space<vmem>>, vector<8x512xf32>
    tpu.vector_store %arg8[%c64, %c0_25], %59 {strides = array<i32>} : memref<72x512xf32, #tpu.memory_space<vmem>>, vector<8x512xf32>,
    %c0_26 = arith.constant 0 : index
    %c0_27 = arith.constant 0 : index
    %61 = vector.load %arg8[%c0_26, %c0_27] : memref<72x512xf32, #tpu.memory_space<vmem>>, vector<72x512xf32>
    %62 = arith.truncf %61 : vector<72x512xf32> to vector<72x512xbf16>
    %cst_28 = arith.constant dense<0.000000e+00> : vector<8x512xf32>
    %63 = tpu.matmul %30, %62, %cst_28 {dimension_numbers = #tpu.dot_dimension_numbers<[1], [0], [0], [1], [0, 0, 1, 1], [], []>} : vector<8x72xbf16>, vector<72x512xbf16>, vector<8x512xf32> -> vector<8x512xf32>
    %c0_29 = arith.constant 0 : index
    %c0_30 = arith.constant 0 : index
    %64 = vector.load %arg5[%c0_29, %c0_30] : memref<8x1xf32, #tpu.memory_space<vmem>>, vector<8x1xf32>
    %65 = vector.broadcast %64 : vector<8x1xf32> to vector<8x512xf32>
    %66 = arith.addf %63, %65 : vector<8x512xf32>
    %c0_31 = arith.constant 0 : index
    %c0_32 = arith.constant 0 : index
    %67 = vector.load %arg6[%c0_31, %c0_32] : memref<8x512xf32, #tpu.memory_space<vmem>>, vector<8x512xf32>
    tpu.vector_store %arg6[%c0_31, %c0_32], %66 {strides = array<i32>} : memref<8x512xf32, #tpu.memory_space<vmem>>, vector<8x512xf32>,
    return
  }
  func.func @transform_0(%arg0: i32) -> (i32, i32) {
    %c0_i32 = arith.constant 0 : i32
    %c0_i32_0 = arith.constant 0 : i32
    %c0_i32_1 = arith.constant 0 : i32
    return %c0_i32, %c0_i32_0 : i32, i32
  }
  func.func @transform_1(%arg0: i32) -> (i32, i32) {
    %c0_i32 = arith.constant 0 : i32
    %c0_i32_0 = arith.constant 0 : i32
    %c0_i32_1 = arith.constant 0 : i32
    return %c0_i32, %c0_i32_0 : i32, i32
  }
  func.func @transform_2(%arg0: i32) -> (i32, i32) {
    %c0_i32 = arith.constant 0 : i32
    %c0_i32_0 = arith.constant 0 : i32
    return %c0_i32, %arg0 : i32, i32
  }
  func.func @transform_3(%arg0: i32) -> (i32, i32) {
    %c1_i32 = arith.constant 1 : i32
    %0 = arith.addi %arg0, %c1_i32 : i32
    %c4_i32 = arith.constant 4 : i32
    %1 = arith.muli %0, %c4_i32 : i32
    %c0_i32 = arith.constant 0 : i32
    %c0_i32_0 = arith.constant 0 : i32
    return %c0_i32, %1 : i32, i32
  }
  func.func @transform_4(%arg0: i32) -> (i32, i32) {
    %c0_i32 = arith.constant 0 : i32
    %c0_i32_0 = arith.constant 0 : i32
    %c0_i32_1 = arith.constant 0 : i32
    return %c0_i32, %c0_i32_0 : i32, i32
  }
  func.func @transform_5(%arg0: i32) -> (i32, i32) {
    %c0_i32 = arith.constant 0 : i32
    %c0_i32_0 = arith.constant 0 : i32
    return %c0_i32, %arg0 : i32, i32
  }
  func.func @transform_6(%arg0: i32) -> (i32, i32) {
    %c0_i32 = arith.constant 0 : i32
    %c0_i32_0 = arith.constant 0 : i32
    %c0_i32_1 = arith.constant 0 : i32
    return %c0_i32, %c0_i32_0 : i32, i32
  }
}

</mosaic_0001>

<bundles_post_ra>
// kernel: tpu_custom_call.1
= control target key start
LH: loop header
LB: loop body
LE: loop exit
PB: predicated region body
PF: predicated region fallthrough
CT: control target
= control target key end

     0   :  { %s1798_s0 = inlined_call_operand.vmem [shape: f32[8,72], index: 0, kind: input, shape index: {}]   ;;  %s1799_s1 = inlined_call_operand.vmem [shape: f32[1,8], index: 1, kind: input, shape index: {}]   ;;  %s1800_s2 = inlined_call_operand.hbm [shape: bf16[8,1536], index: 2, kind: input, shape index: {}]   ;;  %s1801_s3 = inlined_call_operand.hbm [shape: bf16[8,1536], index: 3, kind: input, shape index: {}]   ;;  %s1802_s4 = inlined_call_operand.vmem [shape: f32[8,1], index: 4, kind: input, shape index: {}]   ;;  %s1803_s5 = inlined_call_operand.hbm [shape: f32[8,1024], index: 5, kind: output, shape index: {0}]   ;;  %s1804_s6 = inlined_call_operand.hbm [shape: f32[1,1], index: 6, kind: output, shape index: {1}]  }
   0x1   :  { %1812 = sst [smem:[#allocation19_spill]] %s1800_s2 }
   0x2   :  { %12 = vsyncpa [#allocation4], 0 }
   0x3   :  { %14 = vsyncpa [#allocation4 + $0x1], 0 }
   0x4   :  { %15 = vsyncpa [#allocation7], 0 }
   0x5   :  { %17 = vsyncpa [#allocation7 + $0x1], 0 }
   0x6   :  { %18 = vsyncpa [#allocation5], 0 }
   0x7   :  { %20 = vsyncpa [#allocation5 + $0x1], 0 }
   0x8   :  { %21 = vsyncpa [#allocation10], 0  ;;  %s1391_s21 = smov 0   ;;  %s1393_s22 = smov 0  }
   0x9   :  { %s1395_s23 = smov 0   ;;  %s1397_s24 = smov 0  }
   0xa   :  { %s1399_s25 = smov 0   ;;  %s1401_s26 = smov 0  }
   0xb   :  { %s1403_s27 = smov 0  }
   0xc LB: > { %1813 = sst [smem:[#allocation15_spill]] %s1340_s26  ;;  %s1427_s28 = sadd.s32 4294967295, %s1344_s27   ;;  %s1344_s27 = sphi %s1403_s27, %s1833_s27   ;;  %s1340_s26 = sphi %s1401_s26, %s1836_s26   ;;  %s1336_s25 = sphi %s1399_s25, %s1841_s25   ;;  %s1332_s24 = sphi %s1397_s24, %s1840_s24   ;;  %s1328_s23 = sphi %s1395_s23, %s1839_s23   ;;  %s1324_s22 = sphi %s1393_s22, %s1838_s22   ;;  %s1320_s21 = sphi %s1391_s21, %s1837_s21  }
   0xd   : > { %s931_s29 = sadd.s32 4294967294, %s1344_s27   ;;  %s1431_s30 = sadd.s32 1, %s1344_s27  }
   0xe   : > { %1814 = sst [smem:[#allocation16_spill]] %s1431_s30  ;;  %s76_s7 = sadd.s32 1, %s1340_s26 }
   0xf   : > { %s73_s8 = ssub.s32 %s1344_s27, %s1431_s30  ;;  %p83_p0 = scmp.ne.s32.totalorder %s1340_s26, %s1336_s25 }
  0x10   : > { %p74_p1 = scmp.eq.s32.totalorder %s73_s8, 0  ;;  %p1811_p2 = scmp.eq.s32.totalorder %s1344_s27, 0 }
  0x11   : > { %p89_p3 = scmp.ne.s32.totalorder %s1336_s25, %s1332_s24  ;;  %p1810_p4 = scmp.eq.s32.totalorder %s1427_s28, 0 }
  0x12   : > { %s1443_s9 = scalar_select %p74_p1, %s1340_s26, %s76_s7  }
  0x13   : > { %p1447_p5 = por %p1811_p2, %p83_p0  ;;  %p1453_p6 = por %p1810_p4, %p89_p3 }
  0x14   : > { %1815 = sst [smem:[#allocation17_spill]] %s1443_s9  ;;  %p1808_p7 = scmp.eq.s32.totalorder %s1427_s28, 1 }
  0x15   : > { %p170_p8 = scmp.eq.s32.totalorder %s931_s29, 1  ;;  %p1809_p10 = scmp.lt.s32.totalorder %s1344_s27, 2 }
  0x16   : > { %p1462_p11 = por %p1808_p7, %p83_p0  ;;  %s220_s14 = sand.u32 1, %s1340_s26  }
  0x17   : > { %p1466_p12 = por %p170_p8, %p89_p3  ;;  %s963_s15 = sshll.u32 %s1344_s27, 4 }
  0x18   : > { %s936_s16 = sshll.u32 %s220_s14, 4  ;;  %s1820_s2 = sld [smem:[#allocation19_spill]] }
  0x19   : > { %s224_s29 = scalar_lea.vmem [#allocation3], %s936_s16  ;;  %p1481_p13 = pnand %p1809_p10, %p1447_p5 }
  0x1a   : > { %s233_s7 = sshll.u32 %s224_s29, 4  ;;  %p941_p0 = scmp.ge.s32.totalorder %s1344_s27, 1  ;;  %s234_s7 = int_to_ptr.vmem [resolvable:$true] %s233_s7 }
  0x1b   : > { %p259_p1 = scmp.lt.s32.totalorder %s1344_s27, 3  ;;  %s221_s9 = scalar_lea.sflag [#allocation4], %s220_s14 }
  0x1c   : > { %p1162_p8 = pneg %p1481_p13 }
  0x1e   : > { %s229_s19 = scalar_lea.hbm %s1820_s2, %s963_s15  ;;  %s1165_s10 = scalar_lea.hbm %s1820_s2, 48 }
  0x1f   : > { %s231_s20 = sshll.u32 %s229_s19, 4  ;;  %s232_s20 = int_to_ptr.hbm [resolvable:$true] %s231_s20 }
  0x20   : > { %s1158_s26 = sshra.s32 %s232_s20, 4  ;;  %s1159_s26 = int_to_ptr.hbm [resolvable:$true] %s1158_s26 }
  0x21   : > { %s1160_s30 = scalar_lea.hbm %s1159_s26, 16  ;;  %p1166_p5 = scmp.lt.s32.totalorder %s1159_s26, %s1820_s2 }
  0x22   : > { %p1161_p3 = scmp.ne.s32.totalorder %s1159_s26, %s1160_s30  ;;  %p1167_p10 = scmp.lt.s32.totalorder %s1165_s10, %s1160_s30 }
  0x24   : > { %p1163_p9 = pnand %p1162_p8, %p1161_p3  ;;  %p1168_p4 = por %p1167_p10, %p1166_p5 }
  0x26   : > { %p1164_p7 = pneg %p1163_p9 }
  0x28   : > { %p1169_p2 = pnand %p1168_p4, %p1164_p7 }
  0x2a   : > { %1172 = shalt.err (!%p1169_p2)
}
  0x2b   : > { %988 = dma.hbm_to_vmem [thread:$0]  (!%p1481_p13), %s232_s20, 256, %s234_s7, %s221_s9  }
  0x2c   : > { %p1501_p4 = pnand %p941_p0, %p259_p1  ;;  %s959_s30 = sshll.u32 %s1344_s27, 2 }
  0x2d   : > { %s960_s14 = sadd.s32 4, %s959_s30  ;;  %s106_s29 = sadd.s32 1, %s1328_s23 }
  0x2e   : > { %s962_s8 = sadd.s32 4, %s960_s14  ;;  %p113_p2 = scmp.ne.s32.totalorder %s1328_s23, %s1324_s22 }
  0x2f   : > { %s103_s16 = ssub.s32 %s960_s14, %s962_s8  ;;  %p119_p7 = scmp.ne.s32.totalorder %s1324_s22, %s1320_s21 }
  0x30   : > { %p104_p9 = scmp.eq.s32.totalorder %s103_s16, 0  ;;  %p1823_p10 = scmp.eq.s32.totalorder %s1344_s27, 0 }
  0x31   : > { %p1824_p8 = scmp.eq.s32.totalorder %s1427_s28, 0  ;;  %s240_s20 = sand.u32 1, %s1328_s23  }
  0x32   : > { %p115_p3 = por %p113_p2, %p1823_p10  ;;  %s939_s17 = sshll.u32 %s240_s20, 2 }
  0x33   : > { %p1515_p5 = por %p119_p7, %p1824_p8  ;;  %s867_s19 = scalar_lea.hbm %s1801_s3, %s963_s15 }
  0x34   : > { %s1521_s7 = scalar_select %p104_p9, %s1328_s23, %s106_s29  }
  0x35   : > { %s868_s30 = scalar_lea.hbm %s867_s19, 16  ;;  %s244_s14 = scalar_lea.vmem [#allocation6], %s939_s17 }
  0x36   : > { %1826 = sst [smem:[#allocation18_spill]] %s1521_s7  ;;  %s254_s21 = sshll.u32 %s244_s14, 4  ;;  %s255_s21 = int_to_ptr.vmem [resolvable:$true] %s254_s21 }
  0x37   : > { %s252_s8 = sshll.u32 %s868_s30, 4  ;;  %p1827_p13 = scmp.lt.s32.totalorder %s1344_s27, 2  ;;  %s253_s8 = int_to_ptr.hbm [resolvable:$true] %s252_s8 }
  0x38   : > { %s241_s29 = scalar_lea.sflag [#allocation7], %s240_s20  ;;  %s1188_s2 = sshra.s32 %s253_s8, 4  ;;  %s1189_s2 = int_to_ptr.hbm [resolvable:$true] %s1188_s2 }
  0x39   : > { %p1530_p0 = pnand %p1827_p13, %p115_p3  ;;  %s1190_s7 = scalar_lea.hbm %s1189_s2, 4 }
  0x3a   : > { %p1191_p1 = scmp.ne.s32.totalorder %s1189_s2, %s1190_s7  ;;  %s1195_s10 = scalar_lea.hbm %s1801_s3, 48 }
  0x3b   : > { %p1192_p2 = pneg %p1530_p0  ;;  %p1196_p10 = scmp.lt.s32.totalorder %s1189_s2, %s1801_s3 }
  0x3c   : > { %p1197_p3 = scmp.lt.s32.totalorder %s1195_s10, %s1190_s7 }
  0x3d   : > { %p1193_p7 = pnand %p1192_p2, %p1191_p1 }
  0x3e   : > { %p1198_p8 = por %p1197_p3, %p1196_p10 }
  0x3f   : > { %p1194_p9 = pneg %p1193_p7 }
  0x41   : > { %p1199_p13 = pnand %p1198_p8, %p1194_p9 }
  0x43   : > { %1202 = shalt.err (!%p1199_p13)
}
  0x44   : > { %991 = dma.hbm_to_vmem [thread:$0]  (!%p1530_p0), %s253_s8, 64, %s255_s21, %s241_s29  }
  0x45   : > { %263 = sbr.rel (%p1501_p4) target bundleno = 1173 (0x495), region = 40  ;;  %s1547_s20 = sand.u32 (!%p1501_p4), 1, %s1336_s25  }
  0x46   : > { %s942_s30 = sshll.u32 (!%p1501_p4), %s1547_s20, 4  ;;  %s266_s14 = scalar_lea.sflag (!%p1501_p4), [#allocation4], %s1547_s20 }
  0x47   : > { %s1551_s15 = scalar_lea.vmem (!%p1501_p4), [#allocation3], %s942_s30 }
  0x4a   : > { %1303 = dma.done.wait (%p1453_p6), %s266_s14, 256  }
  0x4b   : > { %1305 = vsyncadd (%p1453_p6), %s266_s14, 4294967040  ;;  %s275_s2 = sand.u32 1, %s1324_s22  }
  0x4c   : > { %s1558_s26 = sshll.u32 %s275_s2, 2  ;;  %s276_s7 = scalar_lea.sflag [#allocation7], %s275_s2 }
  0x4d   : > { %s279_s21 = scalar_lea.vmem [#allocation6], %s1558_s26 }
  0x4e   : > { %1307 = dma.done.wait (%p1515_p5), %s276_s7, 64  }
  0x4f   : > { %1309 = vsyncadd (%p1515_p5), %s276_s7, 4294967232  ;;  %vm321_vm0 = vcmask 64512   ;;  %v1568_v0 = vld [vmem:[%s1798_s0] sm:$0xff]  ;;  %vm346_vm1 = vcmask 581632   ;;  %vm388_vm4 = vcmask 588800   ;;  %vm416_vm9 = vcmask 57344  }
  0x50   : > { %v320_v1 = vld [vmem:[%s1799_s1] sm:$0x1]  ;;  %340 = vmatpush.msra.mxu0 %v1568_v0  ;;  %946 = vmatpush.xpose.msk.msra.mxu1 %vm388_vm4, %v1568_v0  ;;  %v483_v38 = vld [vmem:[%s1551_s15 + $0x8] sm:$0xff]  ;;  %s1346_s18 = smov 90   ;;  %s1347_s19 = smov 92  }
  0x51   : > { %945 = vmatmul.msk.f32.vlgmr.msra.gmra.mxu0 %vm321_vm0, %v320_v1  ;;  %v489_v39 = vunpack.c.l.b16 %v483_v38  ;;  %v490_v40 = vunpack.c.h.b16 %v483_v38  ;;  %v482_v53 = vld [vmem:[%s1551_s15] sm:$0xff]  ;;  %s1348_s30 = smov 91   ;;  %s1349_s14 = smov 109  }
  0x52   : > { %v487_v54 = vunpack.c.l.b16 %v482_v53  ;;  %v488_v55 = vunpack.c.h.b16 %v482_v53  ;;  %v484_v61 = vld [vmem:[%s279_s21] sm:$0xf]  ;;  %s1350_s15 = smov 108   ;;  %s1351_s2 = smov 126  }
  0x53   : > { %v493_v41 = vpack.c.b16 %v489_v39, %v489_v39  ;;  %v494_v42 = vpack.c.b16 %v490_v40, %v490_v40  ;;  %v1604_v62 = vunpack.c.l.bf16 %v484_v61  ;;  %s1352_s26 = smov 110   ;;  %s1353_s21 = smov 127  }
  0x54   : > { %v1591_v56 = vpack.c.b16 %v487_v54, %v487_v54  ;;  %v1593_v57 = vpack.c.b16 %v488_v55, %v488_v55  ;;  %p1829_p6 = scmp.eq.s32.totalorder %s1427_s28, 1 }
  0x55   : > { %v1583_v43 = vunpack.c.l.bf16 %v493_v41  ;;  %v1585_v44 = vunpack.c.l.bf16 %v494_v42 }
  0x56   : > { %v499_v58 = vunpack.c.l.bf16 %v1591_v56  ;;  %v500_v59 = vunpack.c.l.bf16 %v1593_v57  ;;  %v718_v56 = vld [vmem:[%s1802_s4] sm:$0xff]  ;;  %v1354_v57 = vmov 0  }
  0x57   : > { %v1071_v45 = vpack.i.bf16 %v1585_v44, %v1583_v43  ;;  %1146 = vset.pattern.permute.xlu2 %v1354_v57  ;;  %1147 = vset.pattern.permute.xlu0 %v1354_v57 }
  0x58   : > { %v1076_v60 = vpack.i.bf16 %v500_v59, %v499_v58 }
  0x59   : > { %1072 = vrot.lane.b32.xlu2 %v1071_v45, %s1346_s18 }
  0x5a   : > { %1067 = vrot.lane.b32.xlu1 %v1076_v60, %s1346_s18 }
  0x61   : > { %1077 = vrot.lane.b32.xlu2 %v1076_v60, %s1347_s19 }
  0x62   : > { %1097 = vrot.lane.b32.xlu1 %v1076_v60, %s1349_s14 }
  0x69   : > { %1087 = vrot.lane.b32.xlu2 %v1076_v60, %s1348_s30 }
  0x6a   : > { %1112 = vrot.lane.b32.xlu1 %v1071_v45, %s1350_s15 }
  0x71   : > { %1092 = vrot.lane.b32.xlu2 %v1071_v45, %s1348_s30 }
  0x72   : > { %1117 = vrot.lane.b32.xlu1 %v1076_v60, %s1351_s2 }
  0x79   : > { %651 = vrot.lane.b32.xlu2 %v1604_v62, %s1346_s18 }
  0x7a   : > { %1132 = vrot.lane.b32.xlu1 %v1071_v45, %s1352_s26 }
  0x81   : > { %1107 = vrot.lane.b32.xlu2 %v1076_v60, %s1350_s15 }
  0x82   : > { %1137 = vrot.lane.b32.xlu1 %v1076_v60, %s1353_s21 }
  0x89   : > { %632 = vrot.lane.b32.xlu2 %v1604_v62, %s1348_s30  ;;  %s944_s30 = sshll.u32 %s1547_s20, 5 }
  0x91   : > { %1127 = vrot.lane.b32.xlu2 %v1076_v60, %s1352_s26 }
  0x99   : > { %594 = vrot.lane.b32.xlu2 %v1604_v62, %s1350_s15  ;;  %s311_s15 = scalar_lea.vmem [#allocation8], %s944_s30 }
  0xa1   : > { %537 = vrot.lane.b32.xlu2 %v1604_v62, %s1351_s2 }
  0xa9   : > { %721 = vperm.xlu2 %1146, %v718_v56  }
  0xcc   : > { %v1068_v38 = vpop.permute.xlu1 %1067 }
  0xcd   : > { %v1070_v40 = vunpack.i.h.bf16 %v1068_v38  ;;  %v1069_v41 = vunpack.i.l.bf16 %v1068_v38 }
  0xce   : > { %v342_v2 = vpop.f32.mrf.mxu0 }
  0xcf   : > { %v345_v3 = vmul.f32 %v342_v2, %v342_v2 }
  0xd1   : > { %v347_v4 = vsel %vm346_vm1, %v345_v3, 0.0 }
  0xd2   : > { %348 = vadd.xlane.f32.xlu0 %v347_v4 }
 0x145   : > { %v349_v5 = vpop.xlane.xlu0 %348 }
 0x146   : > { %v350_v6 = vrot.slane %v349_v5, 4 }
 0x148   : > { %v351_v7 = vadd.f32 %v350_v6, %v349_v5 }
 0x14a   : > { %v352_v8 = vrot.slane %v351_v7, 2 }
 0x14c   : > { %v353_v9 = vadd.f32 %v352_v8, %v351_v7 }
 0x14e   : > { %v354_v10 = vrot.slane %v353_v9, 1 }
 0x150   : > { %v355_v11 = vadd.f32 %v354_v10, %v353_v9 }
 0x152   : > { %967 = vpush %v355_v11  ;;  %v1619_v11 = vpop.permute.xlu2 %1072 }
 0x183   : > { %s968_s9 = spop %967 }
 0x184   : > { %v357_v12 = vstv %s968_s9  ;;  %s1355_s9 = smov [#allocation9]  }
 0x185   : > { %1148 = vrsqrt.f32 %v357_v12  ;;  %vm365_vm2 = vcmp.eq.f32.partialorder %v357_v12, inf  ;;  %v368_v20 = vand.u32 2147483648, %v357_v12  ;;  %vm367_vm3 = vcmp.eq.f32.partialorder %v357_v12, 0.0 }
 0x18b   : > { %v1149_v13 = vpop.eup %1148 }
 0x18c   : > { %v359_v14 = vmul.f32 %v1149_v13, %v357_v12 }
 0x18e   : > { %v360_v15 = vmul.f32 %v1149_v13, %v359_v14 }
 0x190   : > { %v361_v16 = vmul.f32 0.5, %v360_v15 }
 0x192   : > { %v362_v17 = vsub.f32 1.5, %v361_v16 }
 0x194   : > { %v363_v18 = vmul.f32 %v1149_v13, %v362_v17  ;;  %v1141_v13 = vpack.i.bf16 %v1604_v62, %v1585_v44  ;;  %v518_v17 = vlaneseq }
 0x196   : > { %v364_v19 = vmul.f32 %v363_v18, %v357_v12 }
 0x198   : > { %v366_v21 = vsel %vm365_vm2, %v357_v12, %v364_v19  ;;  %v1078_v12 = vpop.permute.xlu2 %1077 }
 0x199   : > { %v369_v22 = vsel %vm367_vm3, %v368_v20, %v366_v21  ;;  %vm727_vm3 = vcmask 1043456  }
 0x19a   : > { %969 = vpush %v369_v22 }
 0x1a0   : > { %v1088_v14 = vpop.permute.xlu2 %1087 }
 0x1a8   : > { %v1623_v16 = vpop.permute.xlu2 %1092 }
 0x1b0   : > { %v652_v20 = vpop.permute.xlu2 %651 }
 0x1cb   : > { %s970_s17 = spop %969 }
 0x1cc   : > { %s371_s10 = sadd.f32 0.0001, %s970_s17  ;;  %s822_s17 = sshll.u32 %s1355_s9, 4  ;;  %s823_s17 = int_to_ptr.vmem [resolvable:$true] %s822_s17 }
 0x1ce   : > { %v372_v23 = vstv %s371_s10  ;;  %s1266_s10 = scalar_lea.hbm %s1803_s5, 64 }
 0x1cf   : > { %1150 = vrcp.f32 %v372_v23  ;;  %v384_v27 = vand.u32 2147483648, %v372_v23  ;;  %v382_v29 = vand.u32 2147483647, %v372_v23  ;;  %vm378_vm6 = vweird.f32 %v372_v23 }
 0x1d1   : > { %v385_v31 = vor.u32 1.1754944e-38, %v384_v27  ;;  %vm383_vm8 = vcmp.eq.f32.partialorder %v382_v29, 8.507059e+37  ;;  %v1080_v29 = vunpack.i.h.bf16 %v1078_v12 }
 0x1d5   : > { %v1151_v24 = vpop.eup %1150 }
 0x1d6   : > { %v374_v25 = vmul.f32 %v1151_v24, %v372_v23  ;;  %vm379_vm5 = vweird.f32 %v1151_v24  ;;  %v1627_v23 = vand.u32 127, %v518_v17 }
 0x1d7   : > { %vm380_vm7 = vmor %vm378_vm6, %vm379_vm5 }
 0x1d8   : > { %v375_v26 = vsub.f32 1.0, %v374_v25  ;;  %vm653_vm14 = vcmp.lt.s32.totalorder %v1627_v23, 90  ;;  %vm634_vm1 = vcmp.lt.s32.totalorder %v1627_v23, 91  ;;  %vm615_vm2 = vcmp.lt.s32.totalorder %v1627_v23, 92 }
 0x1d9   : > { %v657_v53 = vsel %vm653_vm14, %v1069_v41, %v1070_v40  ;;  %vm596_vm5 = vcmp.lt.s32.totalorder %v1627_v23, 108  ;;  %vm577_vm6 = vcmp.lt.s32.totalorder %v1627_v23, 109 }
 0x1da   : > { %v376_v28 = vmul.f32 %v1151_v24, %v375_v26  ;;  %v1075_v26 = vunpack.i.h.bf16 %v1619_v11 }
 0x1dc   : > { %v377_v30 = vadd.f32 %v1151_v24, %v376_v28  ;;  %v1074_v28 = vunpack.i.l.bf16 %v1619_v11 }
 0x1de   : > { %v381_v32 = vsel %vm380_vm7, %v1151_v24, %v377_v30  ;;  %v1079_v30 = vunpack.i.l.bf16 %v1078_v12  ;;  %v656_v54 = vsel %vm653_vm14, %v1070_v40, %v1074_v28  ;;  %vm558_vm7 = vcmp.lt.s32.totalorder %v1627_v23, 110 }
 0x1df   : > { %v386_v33 = vsel %vm383_vm8, %v385_v31, %v381_v32  ;;  %v1090_v31 = vunpack.i.h.bf16 %v1088_v14  ;;  %vm539_vm8 = vcmp.lt.s32.totalorder %v1627_v23, 126 }
 0x1e0   : > { %v387_v34 = vmul.f32 %v386_v33, %v342_v2  ;;  %v1089_v33 = vunpack.i.l.bf16 %v1088_v14  ;;  %v619_v55 = vsel %vm615_vm2, %v1079_v30, %v1080_v29 }
 0x1e2   : > { %947 = vmatmul.msk.f32.vlgmr.msra.gmra.mxu1 %vm388_vm4, %v387_v34 }
 0x25f   : > { %v1577_v35 = vpop.f32.mrf.mxu1 }
 0x260   : > { %v415_v36 = vmul.f32 %v1577_v35, %v1577_v35 }
 0x262   : > { %v417_v37 = vsel %vm416_vm9, %v415_v36, 0.0  ;;  %v1095_v36 = vunpack.i.h.bf16 %v1623_v16 }
 0x263   : > { %418 = vadd.xlane.f32.xlu0 %v417_v37  ;;  %v654_v37 = vsel %vm653_vm14, %v1075_v26, %v652_v20 }
 0x277   : > { %1082 = vrot.lane.b32.xlu0 %v1071_v45, %s1347_s19 }
 0x27f   : > { %1102 = vrot.lane.b32.xlu0 %v1071_v45, %s1349_s14 }
 0x287   : > { %613 = vrot.lane.b32.xlu0 %v1604_v62, %s1347_s19  ;;  %s824_s19 = sshll.u32 %s1804_s6, 4  ;;  %s825_s19 = int_to_ptr.hbm [resolvable:$true] %s824_s19 }
 0x28f   : > { %1122 = vrot.lane.b32.xlu0 %v1071_v45, %s1351_s2  ;;  %v1094_v45 = vunpack.i.l.bf16 %v1623_v16 }
 0x297   : > { %575 = vrot.lane.b32.xlu0 %v1604_v62, %s1349_s14  ;;  %s964_s14 = sshll.u32 %s1427_s28, 5 }
 0x29f   : > { %512 = vrot.lane.b32.xlu0 %v1583_v43, %s1353_s21 }
 0x2a7   : > { %1142 = vrot.lane.b32.xlu0 %v1141_v13, %s1353_s21  ;;  %s810_s21 = sshll.u32 %s311_s15, 4  ;;  %s811_s21 = int_to_ptr.vmem [resolvable:$true] %s810_s21 }
 0x2d6   : > { %v419_v46 = vpop.xlane.xlu0 %418 }
 0x2d7   : > { %v420_v47 = vrot.slane %v419_v46, 4 }
 0x2d9   : > { %v421_v48 = vadd.f32 %v420_v47, %v419_v46  ;;  %v1638_v47 = vpop.permute.xlu2 %1107 }
 0x2da   : > { %v1109_v61 = vunpack.i.l.bf16 %v1638_v47 }
 0x2db   : > { %v422_v49 = vrot.slane %v421_v48, 2 }
 0x2dd   : > { %v423_v50 = vadd.f32 %v422_v49, %v421_v48 }
 0x2df   : > { %v424_v51 = vrot.slane %v423_v50, 1 }
 0x2e1   : > { %v425_v52 = vadd.f32 %v424_v51, %v423_v50  ;;  %v717_v50 = vpack.c.bf16 %v654_v37, %v654_v37  ;;  %v638_v51 = vsel %vm634_vm1, %v1089_v33, %v1090_v31  ;;  %v633_v16 = vpop.permute.xlu2 %632 }
 0x2e2   : > { %v635_v20 = vsel %vm634_vm1, %v1095_v36, %v633_v16 }
 0x2e3   : > { %971 = vpush %v425_v52  ;;  %v1110_v52 = vunpack.i.h.bf16 %v1638_v47  ;;  %v738_v11 = vsel %vm727_vm3, %v717_v50, 0 }
 0x2e4   : > { %782 = vmatpush.bf16.msrb.mxu1 %v738_v11 }
 0x2e5   : > { %v600_v14 = vsel %vm596_vm5, %v1109_v61, %v1110_v52 }
 0x2e9   : > { %v1625_v21 = vpop.permute.xlu0 %1082  ;;  %v1128_v33 = vpop.permute.xlu2 %1127 }
 0x2ea   : > { %v1084_v46 = vunpack.i.l.bf16 %v1625_v21  ;;  %v1130_v40 = vunpack.i.h.bf16 %v1128_v33  ;;  %v1129_v41 = vunpack.i.l.bf16 %v1128_v33 }
 0x2f1   : > { %v1640_v48 = vpop.permute.xlu0 %1102  ;;  %v595_v50 = vpop.permute.xlu2 %594 }
 0x2f9   : > { %v614_v17 = vpop.permute.xlu0 %613 }
 0x314   : > { %s972_s7 = spop %971 }
 0x315   : > { %v427_v63 = vstv %s972_s7 }
 0x316   : > { %1152 = vrsqrt.f32 %v427_v63  ;;  %vm435_vm10 = vcmp.eq.f32.partialorder %v427_v63, inf  ;;  %v438_v8 = vand.u32 2147483648, %v427_v63  ;;  %vm437_vm11 = vcmp.eq.f32.partialorder %v427_v63, 0.0 }
 0x31c   : > { %v1153_v1 = vpop.eup %1152 }
 0x31d   : > { %v429_v2 = vmul.f32 %v1153_v1, %v427_v63 }
 0x31f   : > { %v430_v3 = vmul.f32 %v1153_v1, %v429_v2  ;;  %v1085_v2 = vunpack.i.h.bf16 %v1625_v21 }
 0x321   : > { %v431_v4 = vmul.f32 0.5, %v430_v3  ;;  %v618_v3 = vsel %vm615_vm2, %v1080_v29, %v1084_v46  ;;  %v616_v21 = vsel %vm615_vm2, %v1085_v2, %v614_v17  ;;  %v1104_v29 = vunpack.i.l.bf16 %v1640_v48 }
 0x323   : > { %v432_v5 = vsub.f32 1.5, %v431_v4  ;;  %v637_v4 = vsel %vm634_vm1, %v1090_v31, %v1094_v45 }
 0x325   : > { %v433_v6 = vmul.f32 %v1153_v1, %v432_v5  ;;  %v715_v1 = vpack.c.bf16 %v656_v54, %v656_v54 }
 0x327   : > { %v434_v7 = vmul.f32 %v433_v6, %v427_v63 }
 0x329   : > { %v436_v9 = vsel %vm435_vm10, %v427_v63, %v434_v7  ;;  %v714_v63 = vpack.c.bf16 %v657_v53, %v657_v53  ;;  %v710_v7 = vpack.c.bf16 %v638_v51, %v619_v55  ;;  %vm462_vm10 = vcmask 0  }
 0x32a   : > { %v439_v10 = vsel %vm437_vm11, %v438_v8, %v436_v9  ;;  %v1098_v8 = vpop.permute.xlu1 %1097  ;;  %v711_v9 = vpack.c.bf16 %v637_v4, %v618_v3 }
 0x32b   : > { %973 = vpush %v439_v10  ;;  %v729_v6 = vsel %vm727_vm3, %v714_v63, 0  ;;  %v655_v10 = vsel %vm653_vm14, %v1074_v28, %v1075_v26  ;;  %v1100_v12 = vunpack.i.h.bf16 %v1098_v8  ;;  %v1099_v13 = vunpack.i.l.bf16 %v1098_v8 }
 0x32c   : > { %743 = vmatpush.bf16.msra.mxu2 %v729_v6  ;;  %v713_v26 = vpack.c.bf16 %v635_v20, %v616_v21  ;;  %v1105_v28 = vunpack.i.h.bf16 %v1640_v48 }
 0x32e   : > { %783 = vmatpush.bf16.msrb.mxu1 %v713_v26  ;;  %v579_v37 = vsel %vm577_vm6, %v1104_v29, %v1105_v28 }
 0x330   : > { %744 = vmatpush.bf16.msra.mxu2 %v710_v7 }
 0x332   : > { %v1113_v30 = vpop.permute.xlu1 %1112 }
 0x333   : > { %v1115_v31 = vunpack.i.h.bf16 %v1113_v30 }
 0x35c   : > { %s974_s8 = spop %973 }
 0x35d   : > { %s441_s16 = sadd.f32 0.0001, %s974_s8 }
 0x35f   : > { %v442_v15 = vstv %s441_s16  ;;  %s797_s16 = scalar_lea.sflag [#allocation5], %s1547_s20 }
 0x360   : > { %1154 = vrcp.f32 %v442_v15  ;;  %v452_v24 = vand.u32 2147483647, %v442_v15  ;;  %v454_v25 = vand.u32 2147483648, %v442_v15  ;;  %vm448_vm13 = vweird.f32 %v442_v15 }
 0x362   : > { %vm453_vm0 = vcmp.eq.f32.partialorder %v452_v24, 8.507059e+37  ;;  %v455_v34 = vor.u32 1.1754944e-38, %v454_v25 }
 0x366   : > { %v1155_v18 = vpop.eup %1154 }
 0x367   : > { %v444_v19 = vmul.f32 %v1155_v18, %v442_v15  ;;  %vm449_vm12 = vweird.f32 %v1155_v18  ;;  %v716_v15 = vpack.c.bf16 %v655_v10, %v655_v10 }
 0x368   : > { %vm450_vm15 = vmor %vm448_vm13, %vm449_vm12 }
 0x369   : > { %v445_v22 = vsub.f32 1.0, %v444_v19  ;;  %v636_v19 = vsel %vm634_vm1, %v1094_v45, %v1095_v36  ;;  %v735_v25 = vsel %vm727_vm3, %v716_v15, 0  ;;  %v580_v36 = vsel %vm577_vm6, %v1100_v12, %v1104_v29 }
 0x36a   : > { %769 = vmatpush.bf16.msrb.mxu0 %v735_v25 }
 0x36b   : > { %v446_v27 = vmul.f32 %v1155_v18, %v445_v22  ;;  %v581_v22 = vsel %vm577_vm6, %v1099_v13, %v1100_v12 }
 0x36c   : > { %v706_v24 = vpack.c.bf16 %v600_v14, %v581_v22 }
 0x36d   : > { %v447_v32 = vadd.f32 %v1155_v18, %v446_v27 }
 0x36e   : > { %745 = vmatpush.bf16.msra.mxu2 %v706_v24 }
 0x36f   : > { %v451_v39 = vsel %vm450_vm15, %v1155_v18, %v447_v32  ;;  %v617_v18 = vsel %vm615_vm2, %v1084_v46, %v1085_v2  ;;  %v1114_v32 = vunpack.i.l.bf16 %v1113_v30  ;;  %v1118_v46 = vpop.permute.xlu1 %1117 }
 0x370   : > { %v456_v42 = vsel %vm453_vm0, %v455_v34, %v451_v39  ;;  %v712_v27 = vpack.c.bf16 %v636_v19, %v617_v18  ;;  %v1683_v34 = vpop.permute.xlu0 %1122  ;;  %v1120_v47 = vunpack.i.h.bf16 %v1118_v46  ;;  %v1119_v48 = vunpack.i.l.bf16 %v1118_v46 }
 0x371   : > { %v457_v49 = vmul.f32 %v456_v42, %v1577_v35  ;;  %v599_v38 = vsel %vm596_vm5, %v1110_v52, %v1114_v32  ;;  %v598_v39 = vsel %vm596_vm5, %v1114_v32, %v1115_v31  ;;  %v597_v52 = vsel %vm596_vm5, %v1115_v31, %v595_v50  ;;  %v538_v32 = vpop.permute.xlu2 %537 }
 0x372   : > { %770 = vmatpush.bf16.msrb.mxu0 %v712_v27  ;;  %v707_v42 = vpack.c.bf16 %v599_v38, %v580_v36  ;;  %v708_v45 = vpack.c.bf16 %v598_v39, %v579_v37  ;;  %v543_v54 = vsel %vm539_vm8, %v1119_v48, %v1120_v47  ;;  %v1125_v61 = vunpack.i.h.bf16 %v1683_v34 }
 0x373   : > { %v458_v60 = vmul.f32 %v457_v49, %v1577_v35  ;;  %v732_v35 = vsel %vm727_vm3, %v715_v1, 0  ;;  %v562_v49 = vsel %vm558_vm7, %v1129_v41, %v1130_v40  ;;  %v1124_v63 = vunpack.i.l.bf16 %v1683_v34 }
 0x374   : > { %756 = vmatpush.bf16.msra.mxu3 %v732_v35  ;;  %v540_v37 = vsel %vm539_vm8, %v1125_v61, %v538_v32 }
 0x375   : > { %v459_v5 = vsel %vm416_vm9, %v458_v60, 0.0  ;;  %v702_v60 = vpack.c.bf16 %v562_v49, %v543_v54  ;;  %v542_v4 = vsel %vm539_vm8, %v1120_v47, %v1124_v63  ;;  %vm520_vm9 = vcmp.lt.s32.totalorder %v1627_v23, 127 }
 0x376   : > { %460 = vadd.xlane.f32.xlu1 %v459_v5  ;;  %771 = vmatpush.bf16.msrb.mxu0 %v708_v45  ;;  %v541_v5 = vsel %vm539_vm8, %v1124_v63, %v1125_v61 }
 0x377   : > { %746 = vmatpush.bf16.msra.mxu2 %v702_v60  ;;  %v1133_v1 = vpop.permute.xlu1 %1132 }
 0x378   : > { %757 = vmatpush.bf16.msra.mxu3 %v711_v9  ;;  %v576_v51 = vpop.permute.xlu0 %575  ;;  %v1135_v2 = vunpack.i.h.bf16 %v1133_v1  ;;  %v1134_v3 = vunpack.i.l.bf16 %v1133_v1 }
 0x379   : > { %v578_v53 = vsel %vm577_vm6, %v1105_v28, %v576_v51  ;;  %v722_v23 = vpop.permute.xlu2 %721 }
 0x37a   : > { %v709_v55 = vpack.c.bf16 %v597_v52, %v578_v53  ;;  %v561_v6 = vsel %vm558_vm7, %v1130_v40, %v1134_v3  ;;  %v560_v35 = vsel %vm558_vm7, %v1134_v3, %v1135_v2 }
 0x37b   : > { %v703_v7 = vpack.c.bf16 %v561_v6, %v542_v4  ;;  %v704_v8 = vpack.c.bf16 %v560_v35, %v541_v5 }
 0x37c   : > { %758 = vmatpush.bf16.msra.mxu3 %v707_v42  ;;  %784 = vmatpush.bf16.msrb.mxu1 %v709_v55 }
 0x37d   : > { %772 = vmatpush.bf16.msrb.mxu0 %v704_v8 }
 0x380   : > { %759 = vmatpush.bf16.msra.mxu3 %v703_v7  ;;  %v513_v9 = vpop.permute.xlu0 %512 }
 0x388   : > { %v1143_v16 = vpop.permute.xlu0 %1142 }
 0x389   : > { %v1144_v17 = vunpack.i.l.bf16 %v1143_v16  ;;  %v1145_v31 = vunpack.i.h.bf16 %v1143_v16 }
 0x38b   : > { %v522_v18 = vsel %vm520_vm9, %v513_v9, %v1144_v17 }
 0x38c   : > { %v700_v19 = vpack.c.bf16 %v522_v18, %v1583_v43 }
 0x38e   : > { %773 = vmatpush.bf16.msrb.mxu0 %v700_v19 }
 0x38f   : > { %556 = vrot.lane.b32.xlu1 %v1604_v62, %s1352_s26  ;;  %v1138_v62 = vpop.permute.xlu1 %1137  ;;  %s808_s26 = scalar_lea.hbm %s1803_s5, %s964_s14 }
 0x390   : > { %v1140_v10 = vunpack.i.h.bf16 %v1138_v62  ;;  %v1139_v11 = vunpack.i.l.bf16 %v1138_v62  ;;  %s812_s8 = sshll.u32 %s808_s26, 4  ;;  %s813_s8 = int_to_ptr.hbm [resolvable:$true] %s812_s8 }
 0x391   : > { %s1260_s11 = sshra.s32 %s813_s8, 4  ;;  %s1261_s11 = int_to_ptr.hbm [resolvable:$true] %s1260_s11 }
 0x392   : > { %v523_v12 = vsel %vm520_vm9, %v1140_v10, %v513_v9  ;;  %v524_v13 = vsel %vm520_vm9, %v1139_v11, %v1140_v10  ;;  %s1262_s29 = scalar_lea.hbm %s1261_s11, 32  ;;  %p1267_p1 = scmp.lt.s32.totalorder %s1261_s11, %s1803_s5 }
 0x393   : > { %v698_v14 = vpack.c.bf16 %v524_v13, %v499_v58  ;;  %v699_v15 = vpack.c.bf16 %v523_v12, %v500_v59  ;;  %p1263_p4 = scmp.ne.s32.totalorder %s1261_s11, %s1262_s29  ;;  %p1268_p2 = scmp.lt.s32.totalorder %s1266_s10, %s1262_s29 }
 0x395   : > { %747 = vmatpush.bf16.msra.mxu2 %v698_v14  ;;  %760 = vmatpush.bf16.msra.mxu3 %v699_v15  ;;  %p1264_p5 = pnand %p1263_p4, %p1462_p11  ;;  %p1269_p7 = por %p1268_p2, %p1267_p1 }
 0x397   : > { %p1265_p0 = pneg %p1264_p5 }
 0x399   : > { %p1270_p9 = pnand %p1269_p7, %p1265_p0 }
 0x3e9   : > { %v461_v20 = vpop.xlane.xlu1 %460 }
 0x3ea   : > { %1156 = vrcp.f32 %v461_v20  ;;  %463 = vst.msk [vmem:[#allocation9] sm:$0x1] %vm462_vm10, %v461_v20  ;;  %v475_v22 = vand.u32 2147483648, %v461_v20  ;;  %v473_v43 = vand.u32 2147483647, %v461_v20  ;;  %vm469_vm12 = vweird.f32 %v461_v20 }
 0x3eb   : > { %981 = dma.vmem_to_hbm [thread:$0]  (%p1829_p6), %s823_s17, 16, %s825_s19, [#allocation10]  }
 0x3ec   : > { %v476_v26 = vor.u32 1.1754944e-38, %v475_v22  ;;  %vm474_vm14 = vcmp.eq.f32.partialorder %v473_v43, 8.507059e+37 }
 0x3f0   : > { %v1157_v58 = vpop.eup %1156 }
 0x3f1   : > { %v465_v59 = vmul.f32 %v1157_v58, %v461_v20  ;;  %vm470_vm11 = vweird.f32 %v1157_v58 }
 0x3f2   : > { %vm471_vm13 = vmor %vm469_vm12, %vm470_vm11 }
 0x3f3   : > { %v466_v21 = vsub.f32 1.0, %v465_v59 }
 0x3f5   : > { %v467_v24 = vmul.f32 %v1157_v58, %v466_v21 }
 0x3f7   : > { %v468_v25 = vadd.f32 %v1157_v58, %v467_v24 }
 0x3f9   : > { %v472_v27 = vsel %vm471_vm13, %v1157_v58, %v468_v25 }
 0x3fa   : > { %v477_v28 = vsel %vm474_vm14, %v476_v26, %v472_v27 }
 0x3fb   : > { %v479_v29 = vperm.slane %v477_v28, 0 }
 0x3fd   : > { %v480_v30 = vmul.f32 %v479_v29, %v1568_v0  ;;  %v521_v0 = vsel %vm520_vm9, %v1144_v17, %v1145_v31 }
 0x3fe   : > { %v701_v40 = vpack.c.bf16 %v521_v0, %v1585_v44 }
 0x3ff   : > { %v481_v33 = vpack.c.bf16 %v480_v30, %v480_v30 }
 0x401   : > { %948 = vmatmul.msk.bf16.vlgmr.msra.gmra.mxu2 %vm388_vm4, %v481_v33  ;;  %v557_v36 = vpop.permute.xlu1 %556  ;;  %949 = vmatmul.msk.bf16.vlgmr.msra.gmra.mxu3 %vm388_vm4, %v481_v33 }
 0x402   : > { %v559_v38 = vsel %vm558_vm7, %v1135_v2, %v557_v36  ;;  %950 = vmatmul.msk.bf16.vlgmr.msrb.gmra.mxu0 %vm388_vm4, %v481_v33 }
 0x403   : > { %v705_v39 = vpack.c.bf16 %v559_v38, %v540_v37 }
 0x405   : > { %785 = vmatpush.bf16.msrb.mxu1 %v705_v39 }
 0x409   : > { %786 = vmatpush.bf16.msrb.mxu1 %v701_v40 }
 0x40c   : > { %951 = vmatmul.msk.bf16.vlgmr.msrb.gmra.mxu1 %vm388_vm4, %v481_v33 }
 0x47f   : > { %v775_v34 = vpop.f32.mrf.mxu0 }
 0x480   : > { %v776_v41 = vadd.f32 %v775_v34, %v722_v23 }
 0x482   : > { %794 = vst [vmem:[%s311_s15 + $0x10] sm:$0xff] %v776_v41 }
 0x484   : > { %v749_v44 = vpop.f32.mrf.mxu2  ;;  %v762_v42 = vpop.f32.mrf.mxu3 }
 0x485   : > { %v750_v45 = vadd.f32 %v749_v44, %v722_v23  ;;  %v763_v46 = vadd.f32 %v762_v42, %v722_v23 }
 0x487   : > { %792 = vst [vmem:[%s311_s15] sm:$0xff] %v750_v45  ;;  %v777_v47 = vpop.f32.mrf.mxu0 }
 0x488   : > { %793 = vst [vmem:[%s311_s15 + $0x8] sm:$0xff] %v763_v46 }
 0x489   : > { %v788_v48 = vpop.f32.mrf.mxu1 }
 0x48a   : > { %v789_v49 = vadd.f32 %v788_v48, %v722_v23 }
 0x48c   : > { %795 = vst [vmem:[%s311_s15 + $0x18] sm:$0xff] %v789_v49  ;;  %v751_v50 = vpop.f32.mrf.mxu2  ;;  %v764_v51 = vpop.f32.mrf.mxu3 }
 0x48d   : > { %1273 = shalt.err (!%p1270_p9)
}
 0x48e   : > { %979 = dma.vmem_to_hbm [thread:$0]  (%p1462_p11), %s811_s21, 512, %s813_s8, %s797_s16  }
 0x48f   : > { %p1830_p10 = pmov %p1829_p6 }
 0x491   : > { %v790_v52 = vpop.f32.mrf.mxu1 }
 0x492   : > { %1311 = dma.done.wait (%p1830_p10), [#allocation10], 16   ;;  %p1831_p3 = pmov %p1829_p6 }
 0x494   : > { %1313 = vsyncadd (%p1831_p3), [#allocation10], 4294967280 }
 0x495 PF: > { %s841_s20 = sand.u32 1, %s1332_s24   ;;  %p1832_p8 = scmp.ge.s32.totalorder %s1344_s27, 2 }
 0x496   : > { %s842_s30 = scalar_lea.sflag [#allocation5], %s841_s20 }
 0x497   : > { %p993_p13 = pnand %p1832_p8, %p1466_p12 }
 0x499   : > { %p994_p6 = pneg %p993_p13 }
 0x49b   : > { %1315 = dma.done.wait (%p994_p6), %s842_s30, 512  }
 0x49c   : > { %1317 = vsyncadd (%p994_p6), %s842_s30, 4294966784  ;;  %s1833_s27 = sld [smem:[#allocation16_spill]]  ;;  %s1837_s21 = smov %s1324_s22 }
 0x49d   : > { %s1834_s12 = sld [smem:[#allocation18_spill]]  ;;  %s1838_s22 = smov %s1328_s23 }
 0x49e   : > { %s1835_s14 = sld [smem:[#allocation15_spill]]  ;;  %s1840_s24 = smov %s1336_s25 }
 0x49f   : > { %s1836_s26 = sld [smem:[#allocation17_spill]] }
 0x4a2   : > { %p24_p11 = scmp.ge.s32.totalorder %s1833_s27, 4  }
 0x4a3   : > { %s1839_s23 = smov %s1834_s12 }
 0x4a4   : > { %s1841_s25 = smov %s1835_s14  ;;  %26 = sbr.rel (!%p24_p11) target bundleno = 12 (0xc), region = 106 }
 0x4a9   :  { %848 = vsyncpa [#allocation4], 1 }
 0x4aa   :  { %850 = vsyncpa [#allocation4 + $0x1], 1 }
 0x4ab   :  { %851 = vsyncpa [#allocation7], 1 }
 0x4ac   :  { %853 = vsyncpa [#allocation7 + $0x1], 1 }
 0x4ad   :  { %854 = vsyncpa [#allocation5], 1 }
 0x4ae   :  { %856 = vsyncpa [#allocation5 + $0x1], 1 }
 0x4af   :  { %857 = vsyncpa [#allocation10], 1 }

</bundles_post_ra>
